<compile_context>
chip_gen: v7x
topology: tpu7x:2x2x1
jax: 0.10.0
libtpu: 0.0.40
codegen_flags: <defaults>
</compile_context>

<pallas_src>
import functools
import math

import jax
import jax.numpy as jnp
from jax.experimental import pallas as pl
from jax.experimental.pallas import tpu as pltpu


# ----------------------------- kernel ---------------------------------------


def _layernorm(x, w, b, eps=1e-5):
    # x: (N, D), w/b: (1, D)
    mu = jnp.mean(x, axis=-1, keepdims=True)
    var = jnp.mean((x - mu) ** 2, axis=-1, keepdims=True)
    return (x - mu) * jax.lax.rsqrt(var + eps) * w + b


def encoder_kernel(
    x_ref,
    ln1w_ref, ln1b_ref,
    wqkv_ref, bqkv_ref,
    wo_ref, bo_ref,
    ln2w_ref, ln2b_ref,
    w1_ref, b1_ref,
    w2_ref, b2_ref,
    o_ref,
    att_ref,                      # VMEM scratch (B*T, D): per-head outputs land here
    *, num_heads: int,
):
    B, T, D = x_ref.shape
    H = num_heads
    hd = D // H
    seg = wqkv_ref.shape[1] // 3  # 128-lane-aligned Q/K/V segment width
    BT = B * T

    # Flatten (B, T, D) -> (B*T, D): leading-dim merge only, last dim unchanged.
    x = x_ref[...].reshape(BT, D)

    # ---- x = LayerNorm(x) ----
    x_ln = _layernorm(x, ln1w_ref[...], ln1b_ref[...])

    # ---- fused Q/K/V projection, segments at lane-tile-aligned offsets ----
    qkv = jnp.dot(x_ln, wqkv_ref[...], preferred_element_type=jnp.float32) + bqkv_ref[...]

    # Reference PyTorch Attention divides by sqrt(T) (sequence length); fold the
    # scale into q (small operand) instead of the (T,T) score tensor.
    inv_scale = 1.0 / math.sqrt(T)
    q = (qkv[:, 0 * seg:0 * seg + D] * inv_scale).reshape(B, T, D)
    k = qkv[:, 1 * seg:1 * seg + D].reshape(B, T, D)
    v = qkv[:, 2 * seg:2 * seg + D].reshape(B, T, D)

    # ---- per-head attention (static loop); each head writes its lane slice of
    # the VMEM scratch immediately, so no concat and no live head outputs ----
    for h in range(H):
        qh = q[:, :, h * hd:(h + 1) * hd]          # (B, T, hd)
        kh = k[:, :, h * hd:(h + 1) * hd]
        vh = v[:, :, h * hd:(h + 1) * hd]
        s = jnp.einsum("bqd,bkd->bqk", qh, kh,
                       preferred_element_type=jnp.float32)          # (B, T, T)
        s = s - jnp.max(s, axis=-1, keepdims=True)
        e = jnp.exp(s)                                               # EUP
        denom = jnp.sum(e, axis=-1, keepdims=True)                   # (B, T, 1)
        # EUP approx reciprocal + one Newton refinement keeps 1e-4 accuracy;
        # normalization is applied once per output row, after p @ v.
        inv = pl.reciprocal(denom, approx=True)
        inv = inv * (2.0 - denom * inv)
        oh = jnp.einsum("bqk,bkd->bqd", e, vh,
                        preferred_element_type=jnp.float32) * inv    # (B, T, hd)
        att_ref[:, h * hd:(h + 1) * hd] = oh.reshape(BT, hd)

    att = att_ref[...]                                               # (B*T, D)
    mha = jnp.dot(att, wo_ref[...], preferred_element_type=jnp.float32) + bo_ref[...]

    # residual from the LayerNorm output (matches the PyTorch Encoder wiring)
    x1 = x_ln + mha

    # ---- FeedForward: LN -> Linear -> ReLU -> Linear, residual from LN output ----
    x2 = _layernorm(x1, ln2w_ref[...], ln2b_ref[...])
    h1 = jnp.maximum(
        jnp.dot(x2, w1_ref[...], preferred_element_type=jnp.float32) + b1_ref[...],
        0.0,
    )
    ffo = jnp.dot(h1, w2_ref[...], preferred_element_type=jnp.float32) + b2_ref[...]
    out = x2 + ffo

    o_ref[...] = out.reshape(B, T, D).astype(o_ref.dtype)


# ----------------------------- wrapper ---------------------------------------


def _round_up(n, m):
    return ((n + m - 1) // m) * m


def encoder_forward(x, params, num_heads, *, batch_grid=None):
    """x: (B, T, D) float32. params: dict of weights (pre-transposed for x @ W).

    batch_grid=None  -> auto: single invocation at small sizes, batch-tiled grid
                        (parallel over B, for v7x's two TensorCores) at large sizes.
    """
    B, T, D = x.shape
    seg = _round_up(D, 128)

    # Pack Q/K/V weights & biases; each segment is padded to a 128-lane boundary
    # so the in-kernel q/k/v slices land on vreg lane-tile boundaries.
    wqkv = jnp.zeros((D, 3 * seg), jnp.float32)
    bqkv = jnp.zeros((1, 3 * seg), jnp.float32)
    for i, (wk_, bk_) in enumerate((("wq", "bq"), ("wk", "bk"), ("wv", "bv"))):
        wqkv = wqkv.at[:, i * seg:i * seg + D].set(params[wk_])
        bqkv = bqkv.at[:, i * seg:i * seg + D].set(params[bk_])

    kernel = functools.partial(encoder_kernel, num_heads=num_heads)
    operands = (
        x,
        params["ln1_w"], params["ln1_b"],
        wqkv, bqkv,
        params["wo"], params["bo"],
        params["ln2_w"], params["ln2_b"],
        params["w1"], params["b1"],
        params["w2"], params["b2"],
    )

    if batch_grid is None:
        # Gate the grid on size: below this, per-step pipeline overhead dominates.
        batch_grid = (B > 1) and (B * T * D >= (1 << 18))

    vmem_limit = 32 * 1024 * 1024  # v5e's scoped default is only 16 MiB; be explicit

    if not batch_grid:
        # Single invocation: every operand resident whole in VMEM, no per-step
        # pipeline overhead, no redundant weight double-buffering.
        vmem = lambda: pl.BlockSpec(memory_space=pltpu.MemorySpace.VMEM)
        return pl.pallas_call(
            kernel,
            out_shape=jax.ShapeDtypeStruct((B, T, D), x.dtype),
            in_specs=[vmem() for _ in operands],
            out_specs=vmem(),
            scratch_shapes=[pltpu.VMEM((B * T, D), jnp.float32)],
            compiler_params=pltpu.CompilerParams(vmem_limit_bytes=vmem_limit),
        )(*operands)

    # Batch-tiled grid: shards batches across TensorCores (v7x has 2) and bounds
    # the per-step activation footprint; weights use constant index_maps so they
    # stay resident instead of being re-fetched every step.
    def resident(arr):
        nd = arr.ndim
        return pl.BlockSpec(arr.shape, lambda b, _nd=nd: (0,) * _nd)

    in_specs = [pl.BlockSpec((1, T, D), lambda b: (b, 0, 0))]
    in_specs += [resident(a) for a in operands[1:]]
    return pl.pallas_call(
        kernel,
        out_shape=jax.ShapeDtypeStruct((B, T, D), x.dtype),
        grid=(B,),
        in_specs=in_specs,
        out_specs=pl.BlockSpec((1, T, D), lambda b: (b, 0, 0)),
        scratch_shapes=[pltpu.VMEM((T, D), jnp.float32)],
        compiler_params=pltpu.CompilerParams(
            dimension_semantics=("parallel",),
            vmem_limit_bytes=vmem_limit),
    )(*operands)


# ----------------------------- reference (pure JAX) ---------------------------


def encoder_reference(x, params, num_heads):
    def ln(x, w, b):
        mu = jnp.mean(x, -1, keepdims=True)
        var = jnp.mean((x - mu) ** 2, -1, keepdims=True)
        return (x - mu) / jnp.sqrt(var + 1e-5) * w + b

    B, T, D = x.shape
    hd = D // num_heads
    x_ln = ln(x, params["ln1_w"], params["ln1_b"])
    q = x_ln @ params["wq"] + params["bq"]
    k = x_ln @ params["wk"] + params["bk"]
    v = x_ln @ params["wv"] + params["bv"]
    q = q.reshape(B, T, num_heads, hd).transpose(0, 2, 1, 3)
    k = k.reshape(B, T, num_heads, hd).transpose(0, 2, 1, 3)
    v = v.reshape(B, T, num_heads, hd).transpose(0, 2, 1, 3)
    score = jnp.einsum("bhqd,bhkd->bhqk", q, k) / jnp.sqrt(jnp.float32(T))
    p = jax.nn.softmax(score, axis=-1)
    att = jnp.einsum("bhqk,bhkd->bhqd", p, v).transpose(0, 2, 1, 3).reshape(B, T, D)
    mha = att @ params["wo"] + params["bo"]
    x1 = x_ln + mha
    x2 = ln(x1, params["ln2_w"], params["ln2_b"])
    ffo = jnp.maximum(x2 @ params["w1"] + params["b1"], 0.0) @ params["w2"] + params["b2"]
    return x2 + ffo


# ----------------------------- main ------------------------------------------


if __name__ == "__main__":
    B, T, D = 2, 8, 32
    NUM_HEADS = 4
    FACTOR = 4
    F = FACTOR * D

    key = jax.random.PRNGKey(0)
    keys = jax.random.split(key, 16)

    def init_w(k, shape, scale=0.05):
        return (scale * jax.random.normal(k, shape)).astype(jnp.float32)

    # All linear weights stored pre-transposed: y = x @ W + b  (W has shape (in, out))
    params = {
        "ln1_w": jnp.ones((1, D), jnp.float32),
        "ln1_b": jnp.zeros((1, D), jnp.float32),
        "wq": init_w(keys[0], (D, D)), "bq": init_w(keys[1], (1, D)),
        "wk": init_w(keys[2], (D, D)), "bk": init_w(keys[3], (1, D)),
        "wv": init_w(keys[4], (D, D)), "bv": init_w(keys[5], (1, D)),
        "wo": init_w(keys[6], (D, D)), "bo": init_w(keys[7], (1, D)),
        "ln2_w": jnp.ones((1, D), jnp.float32),
        "ln2_b": jnp.zeros((1, D), jnp.float32),
        "w1": init_w(keys[8], (D, F)), "b1": init_w(keys[9], (1, F)),
        "w2": init_w(keys[10], (F, D)), "b2": init_w(keys[11], (1, D)),
    }

    x = jax.random.normal(keys[12], (B, T, D), jnp.float32)

    ref = encoder_reference(x, params, NUM_HEADS)

    # Path 1: single invocation (latency-optimal at this toy shape).
    out = jax.block_until_ready(encoder_forward(x, params, NUM_HEADS, batch_grid=False))
    assert out.shape == (B, T, D)
    assert jnp.allclose(out, ref, atol=1e-4, rtol=1e-4), "mismatch (no-grid) vs JAX reference"

    # Path 2: batch-parallel grid (the v7x two-TensorCore path at real sizes).
    out_g = jax.block_until_ready(encoder_forward(x, params, NUM_HEADS, batch_grid=True))
    assert jnp.allclose(out_g, ref, atol=1e-4, rtol=1e-4), "mismatch (grid) vs JAX reference"

    print("KERNEL_OK")
</pallas_src>

<mosaic_0001>
module attributes {stable_mosaic.version = 11 : i64} {
  func.func @encoder_kernel(%arg0: memref<2x8x32xf32, #tpu.memory_space<vmem>>, %arg1: memref<1x32xf32, #tpu.memory_space<vmem>>, %arg2: memref<1x32xf32, #tpu.memory_space<vmem>>, %arg3: memref<32x384xf32, #tpu.memory_space<vmem>>, %arg4: memref<1x384xf32, #tpu.memory_space<vmem>>, %arg5: memref<32x32xf32, #tpu.memory_space<vmem>>, %arg6: memref<1x32xf32, #tpu.memory_space<vmem>>, %arg7: memref<1x32xf32, #tpu.memory_space<vmem>>, %arg8: memref<1x32xf32, #tpu.memory_space<vmem>>, %arg9: memref<32x128xf32, #tpu.memory_space<vmem>>, %arg10: memref<1x128xf32, #tpu.memory_space<vmem>>, %arg11: memref<128x32xf32, #tpu.memory_space<vmem>>, %arg12: memref<1x32xf32, #tpu.memory_space<vmem>>, %arg13: memref<2x8x32xf32, #tpu.memory_space<vmem>>, %arg14: memref<16x32xf32, #tpu.memory_space<vmem>>) attributes {dimension_semantics = [], scalar_prefetch = 0 : i64, scratch_operands = 1 : i64, tpu.core_type = #tpu.core_type<tc>} {
    %c0 = arith.constant 0 : index
    %c0_0 = arith.constant 0 : index
    %c0_1 = arith.constant 0 : index
    %0 = vector.load %arg0[%c0, %c0_0, %c0_1] : memref<2x8x32xf32, #tpu.memory_space<vmem>>, vector<2x8x32xf32>
    %1 = vector.shape_cast %0 : vector<2x8x32xf32> to vector<16x32xf32>
    %c0_2 = arith.constant 0 : index
    %c0_3 = arith.constant 0 : index
    %2 = vector.load %arg1[%c0_2, %c0_3] : memref<1x32xf32, #tpu.memory_space<vmem>>, vector<1x32xf32>
    %c0_4 = arith.constant 0 : index
    %c0_5 = arith.constant 0 : index
    %3 = vector.load %arg2[%c0_4, %c0_5] : memref<1x32xf32, #tpu.memory_space<vmem>>, vector<1x32xf32>
    %cst = arith.constant dense<0.000000e+00> : vector<16xf32>
    %4 = vector.multi_reduction <add>, %1, %cst [1] : vector<16x32xf32> to vector<16xf32>
    %5 = vector.shape_cast %4 : vector<16xf32> to vector<16x1xf32>
    %cst_6 = arith.constant 3.200000e+01 : f32
    %6 = vector.broadcast %cst_6 : f32 to vector<16x1xf32>
    %7 = arith.divf %5, %6 : vector<16x1xf32>
    %8 = vector.broadcast %7 : vector<16x1xf32> to vector<16x32xf32>
    %9 = arith.subf %1, %8 : vector<16x32xf32>
    %10 = arith.mulf %9, %9 : vector<16x32xf32>
    %cst_7 = arith.constant dense<0.000000e+00> : vector<16xf32>
    %11 = vector.multi_reduction <add>, %10, %cst_7 [1] : vector<16x32xf32> to vector<16xf32>
    %12 = vector.shape_cast %11 : vector<16xf32> to vector<16x1xf32>
    %cst_8 = arith.constant 3.200000e+01 : f32
    %13 = vector.broadcast %cst_8 : f32 to vector<16x1xf32>
    %14 = arith.divf %12, %13 : vector<16x1xf32>
    %15 = vector.broadcast %7 : vector<16x1xf32> to vector<16x32xf32>
    %16 = arith.subf %1, %15 : vector<16x32xf32>
    %cst_9 = arith.constant 9.99999974E-6 : f32
    %17 = vector.broadcast %cst_9 : f32 to vector<16x1xf32>
    %18 = arith.addf %14, %17 : vector<16x1xf32>
    %19 = math.rsqrt %18 : vector<16x1xf32>
    %20 = vector.broadcast %19 : vector<16x1xf32> to vector<16x32xf32>
    %21 = arith.mulf %16, %20 : vector<16x32xf32>
    %22 = vector.broadcast %2 : vector<1x32xf32> to vector<16x32xf32>
    %23 = arith.mulf %21, %22 : vector<16x32xf32>
    %24 = vector.broadcast %3 : vector<1x32xf32> to vector<16x32xf32>
    %25 = arith.addf %23, %24 : vector<16x32xf32>
    %c0_10 = arith.constant 0 : index
    %c0_11 = arith.constant 0 : index
    %26 = vector.load %arg3[%c0_10, %c0_11] : memref<32x384xf32, #tpu.memory_space<vmem>>, vector<32x384xf32>
    %cst_12 = arith.constant dense<0.000000e+00> : vector<16x384xf32>
    %27 = tpu.matmul %25, %26, %cst_12 {dimension_numbers = #tpu.dot_dimension_numbers<[1], [0], [0], [1], [0, 0, 1, 1], [], []>} : vector<16x32xf32>, vector<32x384xf32>, vector<16x384xf32> -> vector<16x384xf32>
    %c0_13 = arith.constant 0 : index
    %c0_14 = arith.constant 0 : index
    %28 = vector.load %arg4[%c0_13, %c0_14] : memref<1x384xf32, #tpu.memory_space<vmem>>, vector<1x384xf32>
    %29 = vector.broadcast %28 : vector<1x384xf32> to vector<16x384xf32>
    %30 = arith.addf %27, %29 : vector<16x384xf32>
    %31 = vector.extract_strided_slice %30 {offsets = [0, 0], sizes = [16, 32], strides = [1, 1]} : vector<16x384xf32> to vector<16x32xf32>
    %cst_15 = arith.constant 0.353553385 : f32
    %32 = vector.broadcast %cst_15 : f32 to vector<16x32xf32>
    %33 = arith.mulf %31, %32 : vector<16x32xf32>
    %34 = vector.shape_cast %33 : vector<16x32xf32> to vector<2x8x32xf32>
    %35 = vector.extract_strided_slice %30 {offsets = [0, 128], sizes = [16, 32], strides = [1, 1]} : vector<16x384xf32> to vector<16x32xf32>
    %36 = vector.shape_cast %35 : vector<16x32xf32> to vector<2x8x32xf32>
    %37 = vector.extract_strided_slice %30 {offsets = [0, 256], sizes = [16, 32], strides = [1, 1]} : vector<16x384xf32> to vector<16x32xf32>
    %38 = vector.shape_cast %37 : vector<16x32xf32> to vector<2x8x32xf32>
    %39 = vector.extract_strided_slice %34 {offsets = [0, 0, 0], sizes = [2, 8, 8], strides = [1, 1, 1]} : vector<2x8x32xf32> to vector<2x8x8xf32>
    %40 = vector.extract_strided_slice %36 {offsets = [0, 0, 0], sizes = [2, 8, 8], strides = [1, 1, 1]} : vector<2x8x32xf32> to vector<2x8x8xf32>
    %41 = vector.extract_strided_slice %38 {offsets = [0, 0, 0], sizes = [2, 8, 8], strides = [1, 1, 1]} : vector<2x8x32xf32> to vector<2x8x8xf32>
    "tpu.trace_start"() <{level = 10 : i32, message = "bqd,bkd->bqk"}> : () -> ()
    %cst_16 = arith.constant dense<0.000000e+00> : vector<2x8x8xf32>
    %42 = tpu.matmul %39, %40, %cst_16 {dimension_numbers = #tpu.dot_dimension_numbers<[2], [2], [1], [1], [0, 0, 0, 1, 1, 1], [0], [0]>} : vector<2x8x8xf32>, vector<2x8x8xf32>, vector<2x8x8xf32> -> vector<2x8x8xf32>
    "tpu.trace_stop"() : () -> ()
    %cst_17 = arith.constant dense<0xFF800000> : vector<2x8xf32>
    %43 = vector.multi_reduction <maximumf>, %42, %cst_17 [2] : vector<2x8x8xf32> to vector<2x8xf32>
    %44 = vector.shape_cast %43 : vector<2x8xf32> to vector<2x8x1xf32>
    %45 = vector.broadcast %44 : vector<2x8x1xf32> to vector<2x8x8xf32>
    %46 = arith.subf %42, %45 : vector<2x8x8xf32>
    %47 = math.exp %46 : vector<2x8x8xf32>
    %cst_18 = arith.constant dense<0.000000e+00> : vector<2x8xf32>
    %48 = vector.multi_reduction <add>, %47, %cst_18 [2] : vector<2x8x8xf32> to vector<2x8xf32>
    %49 = vector.shape_cast %48 : vector<2x8xf32> to vector<2x8x1xf32>
    %50 = tpu.reciprocal %49 {approx = true} : vector<2x8x1xf32> -> vector<2x8x1xf32>
    %51 = arith.mulf %49, %50 : vector<2x8x1xf32>
    %cst_19 = arith.constant 2.000000e+00 : f32
    %52 = vector.broadcast %cst_19 : f32 to vector<2x8x1xf32>
    %53 = arith.subf %52, %51 : vector<2x8x1xf32>
    %54 = arith.mulf %50, %53 : vector<2x8x1xf32>
    "tpu.trace_start"() <{level = 10 : i32, message = "bqk,bkd->bqd"}> : () -> ()
    %cst_20 = arith.constant dense<0.000000e+00> : vector<2x8x8xf32>
    %55 = tpu.matmul %47, %41, %cst_20 {dimension_numbers = #tpu.dot_dimension_numbers<[2], [1], [1], [2], [0, 0, 0, 1, 1, 2], [0], [0]>} : vector<2x8x8xf32>, vector<2x8x8xf32>, vector<2x8x8xf32> -> vector<2x8x8xf32>
    "tpu.trace_stop"() : () -> ()
    %56 = vector.broadcast %54 : vector<2x8x1xf32> to vector<2x8x8xf32>
    %57 = arith.mulf %55, %56 : vector<2x8x8xf32>
    %58 = vector.shape_cast %57 : vector<2x8x8xf32> to vector<16x8xf32>
    %c0_21 = arith.constant 0 : index
    %c0_22 = arith.constant 0 : index
    %59 = vector.load %arg14[%c0_21, %c0_22] : memref<16x32xf32, #tpu.memory_space<vmem>>, vector<16x8xf32>
    tpu.vector_store %arg14[%c0_21, %c0_22], %58 {strides = array<i32>} : memref<16x32xf32, #tpu.memory_space<vmem>>, vector<16x8xf32>,
    %60 = vector.extract_strided_slice %34 {offsets = [0, 0, 8], sizes = [2, 8, 8], strides = [1, 1, 1]} : vector<2x8x32xf32> to vector<2x8x8xf32>
    %61 = vector.extract_strided_slice %36 {offsets = [0, 0, 8], sizes = [2, 8, 8], strides = [1, 1, 1]} : vector<2x8x32xf32> to vector<2x8x8xf32>
    %62 = vector.extract_strided_slice %38 {offsets = [0, 0, 8], sizes = [2, 8, 8], strides = [1, 1, 1]} : vector<2x8x32xf32> to vector<2x8x8xf32>
    "tpu.trace_start"() <{level = 10 : i32, message = "bqd,bkd->bqk"}> : () -> ()
    %cst_23 = arith.constant dense<0.000000e+00> : vector<2x8x8xf32>
    %63 = tpu.matmul %60, %61, %cst_23 {dimension_numbers = #tpu.dot_dimension_numbers<[2], [2], [1], [1], [0, 0, 0, 1, 1, 1], [0], [0]>} : vector<2x8x8xf32>, vector<2x8x8xf32>, vector<2x8x8xf32> -> vector<2x8x8xf32>
    "tpu.trace_stop"() : () -> ()
    %cst_24 = arith.constant dense<0xFF800000> : vector<2x8xf32>
    %64 = vector.multi_reduction <maximumf>, %63, %cst_24 [2] : vector<2x8x8xf32> to vector<2x8xf32>
    %65 = vector.shape_cast %64 : vector<2x8xf32> to vector<2x8x1xf32>
    %66 = vector.broadcast %65 : vector<2x8x1xf32> to vector<2x8x8xf32>
    %67 = arith.subf %63, %66 : vector<2x8x8xf32>
    %68 = math.exp %67 : vector<2x8x8xf32>
    %cst_25 = arith.constant dense<0.000000e+00> : vector<2x8xf32>
    %69 = vector.multi_reduction <add>, %68, %cst_25 [2] : vector<2x8x8xf32> to vector<2x8xf32>
    %70 = vector.shape_cast %69 : vector<2x8xf32> to vector<2x8x1xf32>
    %71 = tpu.reciprocal %70 {approx = true} : vector<2x8x1xf32> -> vector<2x8x1xf32>
    %72 = arith.mulf %70, %71 : vector<2x8x1xf32>
    %cst_26 = arith.constant 2.000000e+00 : f32
    %73 = vector.broadcast %cst_26 : f32 to vector<2x8x1xf32>
    %74 = arith.subf %73, %72 : vector<2x8x1xf32>
    %75 = arith.mulf %71, %74 : vector<2x8x1xf32>
    "tpu.trace_start"() <{level = 10 : i32, message = "bqk,bkd->bqd"}> : () -> ()
    %cst_27 = arith.constant dense<0.000000e+00> : vector<2x8x8xf32>
    %76 = tpu.matmul %68, %62, %cst_27 {dimension_numbers = #tpu.dot_dimension_numbers<[2], [1], [1], [2], [0, 0, 0, 1, 1, 2], [0], [0]>} : vector<2x8x8xf32>, vector<2x8x8xf32>, vector<2x8x8xf32> -> vector<2x8x8xf32>
    "tpu.trace_stop"() : () -> ()
    %77 = vector.broadcast %75 : vector<2x8x1xf32> to vector<2x8x8xf32>
    %78 = arith.mulf %76, %77 : vector<2x8x8xf32>
    %79 = vector.shape_cast %78 : vector<2x8x8xf32> to vector<16x8xf32>
    %c0_28 = arith.constant 0 : index
    %c8 = arith.constant 8 : index
    %80 = vector.load %arg14[%c0_28, %c8] : memref<16x32xf32, #tpu.memory_space<vmem>>, vector<16x8xf32>
    tpu.vector_store %arg14[%c0_28, %c8], %79 {strides = array<i32>} : memref<16x32xf32, #tpu.memory_space<vmem>>, vector<16x8xf32>,
    %81 = vector.extract_strided_slice %34 {offsets = [0, 0, 16], sizes = [2, 8, 8], strides = [1, 1, 1]} : vector<2x8x32xf32> to vector<2x8x8xf32>
    %82 = vector.extract_strided_slice %36 {offsets = [0, 0, 16], sizes = [2, 8, 8], strides = [1, 1, 1]} : vector<2x8x32xf32> to vector<2x8x8xf32>
    %83 = vector.extract_strided_slice %38 {offsets = [0, 0, 16], sizes = [2, 8, 8], strides = [1, 1, 1]} : vector<2x8x32xf32> to vector<2x8x8xf32>
    "tpu.trace_start"() <{level = 10 : i32, message = "bqd,bkd->bqk"}> : () -> ()
    %cst_29 = arith.constant dense<0.000000e+00> : vector<2x8x8xf32>
    %84 = tpu.matmul %81, %82, %cst_29 {dimension_numbers = #tpu.dot_dimension_numbers<[2], [2], [1], [1], [0, 0, 0, 1, 1, 1], [0], [0]>} : vector<2x8x8xf32>, vector<2x8x8xf32>, vector<2x8x8xf32> -> vector<2x8x8xf32>
    "tpu.trace_stop"() : () -> ()
    %cst_30 = arith.constant dense<0xFF800000> : vector<2x8xf32>
    %85 = vector.multi_reduction <maximumf>, %84, %cst_30 [2] : vector<2x8x8xf32> to vector<2x8xf32>
    %86 = vector.shape_cast %85 : vector<2x8xf32> to vector<2x8x1xf32>
    %87 = vector.broadcast %86 : vector<2x8x1xf32> to vector<2x8x8xf32>
    %88 = arith.subf %84, %87 : vector<2x8x8xf32>
    %89 = math.exp %88 : vector<2x8x8xf32>
    %cst_31 = arith.constant dense<0.000000e+00> : vector<2x8xf32>
    %90 = vector.multi_reduction <add>, %89, %cst_31 [2] : vector<2x8x8xf32> to vector<2x8xf32>
    %91 = vector.shape_cast %90 : vector<2x8xf32> to vector<2x8x1xf32>
    %92 = tpu.reciprocal %91 {approx = true} : vector<2x8x1xf32> -> vector<2x8x1xf32>
    %93 = arith.mulf %91, %92 : vector<2x8x1xf32>
    %cst_32 = arith.constant 2.000000e+00 : f32
    %94 = vector.broadcast %cst_32 : f32 to vector<2x8x1xf32>
    %95 = arith.subf %94, %93 : vector<2x8x1xf32>
    %96 = arith.mulf %92, %95 : vector<2x8x1xf32>
    "tpu.trace_start"() <{level = 10 : i32, message = "bqk,bkd->bqd"}> : () -> ()
    %cst_33 = arith.constant dense<0.000000e+00> : vector<2x8x8xf32>
    %97 = tpu.matmul %89, %83, %cst_33 {dimension_numbers = #tpu.dot_dimension_numbers<[2], [1], [1], [2], [0, 0, 0, 1, 1, 2], [0], [0]>} : vector<2x8x8xf32>, vector<2x8x8xf32>, vector<2x8x8xf32> -> vector<2x8x8xf32>
    "tpu.trace_stop"() : () -> ()
    %98 = vector.broadcast %96 : vector<2x8x1xf32> to vector<2x8x8xf32>
    %99 = arith.mulf %97, %98 : vector<2x8x8xf32>
    %100 = vector.shape_cast %99 : vector<2x8x8xf32> to vector<16x8xf32>
    %c0_34 = arith.constant 0 : index
    %c16 = arith.constant 16 : index
    %101 = vector.load %arg14[%c0_34, %c16] : memref<16x32xf32, #tpu.memory_space<vmem>>, vector<16x8xf32>
    tpu.vector_store %arg14[%c0_34, %c16], %100 {strides = array<i32>} : memref<16x32xf32, #tpu.memory_space<vmem>>, vector<16x8xf32>,
    %102 = vector.extract_strided_slice %34 {offsets = [0, 0, 24], sizes = [2, 8, 8], strides = [1, 1, 1]} : vector<2x8x32xf32> to vector<2x8x8xf32>
    %103 = vector.extract_strided_slice %36 {offsets = [0, 0, 24], sizes = [2, 8, 8], strides = [1, 1, 1]} : vector<2x8x32xf32> to vector<2x8x8xf32>
    %104 = vector.extract_strided_slice %38 {offsets = [0, 0, 24], sizes = [2, 8, 8], strides = [1, 1, 1]} : vector<2x8x32xf32> to vector<2x8x8xf32>
    "tpu.trace_start"() <{level = 10 : i32, message = "bqd,bkd->bqk"}> : () -> ()
    %cst_35 = arith.constant dense<0.000000e+00> : vector<2x8x8xf32>
    %105 = tpu.matmul %102, %103, %cst_35 {dimension_numbers = #tpu.dot_dimension_numbers<[2], [2], [1], [1], [0, 0, 0, 1, 1, 1], [0], [0]>} : vector<2x8x8xf32>, vector<2x8x8xf32>, vector<2x8x8xf32> -> vector<2x8x8xf32>
    "tpu.trace_stop"() : () -> ()
    %cst_36 = arith.constant dense<0xFF800000> : vector<2x8xf32>
    %106 = vector.multi_reduction <maximumf>, %105, %cst_36 [2] : vector<2x8x8xf32> to vector<2x8xf32>
    %107 = vector.shape_cast %106 : vector<2x8xf32> to vector<2x8x1xf32>
    %108 = vector.broadcast %107 : vector<2x8x1xf32> to vector<2x8x8xf32>
    %109 = arith.subf %105, %108 : vector<2x8x8xf32>
    %110 = math.exp %109 : vector<2x8x8xf32>
    %cst_37 = arith.constant dense<0.000000e+00> : vector<2x8xf32>
    %111 = vector.multi_reduction <add>, %110, %cst_37 [2] : vector<2x8x8xf32> to vector<2x8xf32>
    %112 = vector.shape_cast %111 : vector<2x8xf32> to vector<2x8x1xf32>
    %113 = tpu.reciprocal %112 {approx = true} : vector<2x8x1xf32> -> vector<2x8x1xf32>
    %114 = arith.mulf %112, %113 : vector<2x8x1xf32>
    %cst_38 = arith.constant 2.000000e+00 : f32
    %115 = vector.broadcast %cst_38 : f32 to vector<2x8x1xf32>
    %116 = arith.subf %115, %114 : vector<2x8x1xf32>
    %117 = arith.mulf %113, %116 : vector<2x8x1xf32>
    "tpu.trace_start"() <{level = 10 : i32, message = "bqk,bkd->bqd"}> : () -> ()
    %cst_39 = arith.constant dense<0.000000e+00> : vector<2x8x8xf32>
    %118 = tpu.matmul %110, %104, %cst_39 {dimension_numbers = #tpu.dot_dimension_numbers<[2], [1], [1], [2], [0, 0, 0, 1, 1, 2], [0], [0]>} : vector<2x8x8xf32>, vector<2x8x8xf32>, vector<2x8x8xf32> -> vector<2x8x8xf32>
    "tpu.trace_stop"() : () -> ()
    %119 = vector.broadcast %117 : vector<2x8x1xf32> to vector<2x8x8xf32>
    %120 = arith.mulf %118, %119 : vector<2x8x8xf32>
    %121 = vector.shape_cast %120 : vector<2x8x8xf32> to vector<16x8xf32>
    %c0_40 = arith.constant 0 : index
    %c24 = arith.constant 24 : index
    %122 = vector.load %arg14[%c0_40, %c24] : memref<16x32xf32, #tpu.memory_space<vmem>>, vector<16x8xf32>
    tpu.vector_store %arg14[%c0_40, %c24], %121 {strides = array<i32>} : memref<16x32xf32, #tpu.memory_space<vmem>>, vector<16x8xf32>,
    %c0_41 = arith.constant 0 : index
    %c0_42 = arith.constant 0 : index
    %123 = vector.load %arg14[%c0_41, %c0_42] : memref<16x32xf32, #tpu.memory_space<vmem>>, vector<16x32xf32>
    %c0_43 = arith.constant 0 : index
    %c0_44 = arith.constant 0 : index
    %124 = vector.load %arg5[%c0_43, %c0_44] : memref<32x32xf32, #tpu.memory_space<vmem>>, vector<32x32xf32>
    %cst_45 = arith.constant dense<0.000000e+00> : vector<16x32xf32>
    %125 = tpu.matmul %123, %124, %cst_45 {dimension_numbers = #tpu.dot_dimension_numbers<[1], [0], [0], [1], [0, 0, 1, 1], [], []>} : vector<16x32xf32>, vector<32x32xf32>, vector<16x32xf32> -> vector<16x32xf32>
    %c0_46 = arith.constant 0 : index
    %c0_47 = arith.constant 0 : index
    %126 = vector.load %arg6[%c0_46, %c0_47] : memref<1x32xf32, #tpu.memory_space<vmem>>, vector<1x32xf32>
    %127 = vector.broadcast %126 : vector<1x32xf32> to vector<16x32xf32>
    %128 = arith.addf %125, %127 : vector<16x32xf32>
    %129 = arith.addf %25, %128 : vector<16x32xf32>
    %c0_48 = arith.constant 0 : index
    %c0_49 = arith.constant 0 : index
    %130 = vector.load %arg7[%c0_48, %c0_49] : memref<1x32xf32, #tpu.memory_space<vmem>>, vector<1x32xf32>
    %c0_50 = arith.constant 0 : index
    %c0_51 = arith.constant 0 : index
    %131 = vector.load %arg8[%c0_50, %c0_51] : memref<1x32xf32, #tpu.memory_space<vmem>>, vector<1x32xf32>
    %cst_52 = arith.constant dense<0.000000e+00> : vector<16xf32>
    %132 = vector.multi_reduction <add>, %129, %cst_52 [1] : vector<16x32xf32> to vector<16xf32>
    %133 = vector.shape_cast %132 : vector<16xf32> to vector<16x1xf32>
    %cst_53 = arith.constant 3.200000e+01 : f32
    %134 = vector.broadcast %cst_53 : f32 to vector<16x1xf32>
    %135 = arith.divf %133, %134 : vector<16x1xf32>
    %136 = vector.broadcast %135 : vector<16x1xf32> to vector<16x32xf32>
    %137 = arith.subf %129, %136 : vector<16x32xf32>
    %138 = arith.mulf %137, %137 : vector<16x32xf32>
    %cst_54 = arith.constant dense<0.000000e+00> : vector<16xf32>
    %139 = vector.multi_reduction <add>, %138, %cst_54 [1] : vector<16x32xf32> to vector<16xf32>
    %140 = vector.shape_cast %139 : vector<16xf32> to vector<16x1xf32>
    %cst_55 = arith.constant 3.200000e+01 : f32
    %141 = vector.broadcast %cst_55 : f32 to vector<16x1xf32>
    %142 = arith.divf %140, %141 : vector<16x1xf32>
    %143 = vector.broadcast %135 : vector<16x1xf32> to vector<16x32xf32>
    %144 = arith.subf %129, %143 : vector<16x32xf32>
    %cst_56 = arith.constant 9.99999974E-6 : f32
    %145 = vector.broadcast %cst_56 : f32 to vector<16x1xf32>
    %146 = arith.addf %142, %145 : vector<16x1xf32>
    %147 = math.rsqrt %146 : vector<16x1xf32>
    %148 = vector.broadcast %147 : vector<16x1xf32> to vector<16x32xf32>
    %149 = arith.mulf %144, %148 : vector<16x32xf32>
    %150 = vector.broadcast %130 : vector<1x32xf32> to vector<16x32xf32>
    %151 = arith.mulf %149, %150 : vector<16x32xf32>
    %152 = vector.broadcast %131 : vector<1x32xf32> to vector<16x32xf32>
    %153 = arith.addf %151, %152 : vector<16x32xf32>
    %c0_57 = arith.constant 0 : index
    %c0_58 = arith.constant 0 : index
    %154 = vector.load %arg9[%c0_57, %c0_58] : memref<32x128xf32, #tpu.memory_space<vmem>>, vector<32x128xf32>
    %cst_59 = arith.constant dense<0.000000e+00> : vector<16x128xf32>
    %155 = tpu.matmul %153, %154, %cst_59 {dimension_numbers = #tpu.dot_dimension_numbers<[1], [0], [0], [1], [0, 0, 1, 1], [], []>} : vector<16x32xf32>, vector<32x128xf32>, vector<16x128xf32> -> vector<16x128xf32>
    %c0_60 = arith.constant 0 : index
    %c0_61 = arith.constant 0 : index
    %156 = vector.load %arg10[%c0_60, %c0_61] : memref<1x128xf32, #tpu.memory_space<vmem>>, vector<1x128xf32>
    %157 = vector.broadcast %156 : vector<1x128xf32> to vector<16x128xf32>
    %158 = arith.addf %155, %157 : vector<16x128xf32>
    %cst_62 = arith.constant 0.000000e+00 : f32
    %159 = vector.broadcast %cst_62 : f32 to vector<16x128xf32>
    %160 = arith.maximumf %158, %159 : vector<16x128xf32>
    %c0_63 = arith.constant 0 : index
    %c0_64 = arith.constant 0 : index
    %161 = vector.load %arg11[%c0_63, %c0_64] : memref<128x32xf32, #tpu.memory_space<vmem>>, vector<128x32xf32>
    %cst_65 = arith.constant dense<0.000000e+00> : vector<16x32xf32>
    %162 = tpu.matmul %160, %161, %cst_65 {dimension_numbers = #tpu.dot_dimension_numbers<[1], [0], [0], [1], [0, 0, 1, 1], [], []>} : vector<16x128xf32>, vector<128x32xf32>, vector<16x32xf32> -> vector<16x32xf32>
    %c0_66 = arith.constant 0 : index
    %c0_67 = arith.constant 0 : index
    %163 = vector.load %arg12[%c0_66, %c0_67] : memref<1x32xf32, #tpu.memory_space<vmem>>, vector<1x32xf32>
    %164 = vector.broadcast %163 : vector<1x32xf32> to vector<16x32xf32>
    %165 = arith.addf %162, %164 : vector<16x32xf32>
    %166 = arith.addf %153, %165 : vector<16x32xf32>
    %167 = vector.shape_cast %166 : vector<16x32xf32> to vector<2x8x32xf32>
    %c0_68 = arith.constant 0 : index
    %c0_69 = arith.constant 0 : index
    %c0_70 = arith.constant 0 : index
    %168 = vector.load %arg13[%c0_68, %c0_69, %c0_70] : memref<2x8x32xf32, #tpu.memory_space<vmem>>, vector<2x8x32xf32>
    tpu.vector_store %arg13[%c0_68, %c0_69, %c0_70], %167 {strides = array<i32>} : memref<2x8x32xf32, #tpu.memory_space<vmem>>, vector<2x8x32xf32>,
    return
  }
}

</mosaic_0001>

<bundles_post_ra>
// kernel: tpu_custom_call.1
= control target key start
LH: loop header
LB: loop body
LE: loop exit
PB: predicated region body
PF: predicated region fallthrough
CT: control target
= control target key end

     0   :  { %18 = vsyncpa [#allocation4], 0  ;;  %s2891_s0 = inlined_call_operand.hbm [shape: f32[2,8,32], index: 0, kind: input, shape index: {}]   ;;  %s2892_s1 = inlined_call_operand.vmem [shape: f32[1,32], index: 1, kind: input, shape index: {}]   ;;  %s2893_s2 = inlined_call_operand.vmem [shape: f32[1,32], index: 2, kind: input, shape index: {}]   ;;  %s2894_s3 = inlined_call_operand.vmem [shape: f32[32,384], index: 3, kind: input, shape index: {}]   ;;  %s2895_s4 = inlined_call_operand.vmem [shape: f32[1,384], index: 4, kind: input, shape index: {}]   ;;  %s2896_s5 = inlined_call_operand.vmem [shape: f32[32,32], index: 5, kind: input, shape index: {}]   ;;  %s2897_s6 = inlined_call_operand.vmem [shape: f32[1,32], index: 6, kind: input, shape index: {}]   ;;  %s2898_s7 = inlined_call_operand.vmem [shape: f32[1,32], index: 7, kind: input, shape index: {}]   ;;  %s2899_s8 = inlined_call_operand.vmem [shape: f32[1,32], index: 8, kind: input, shape index: {}]   ;;  %s2900_s9 = inlined_call_operand.vmem [shape: f32[32,128], index: 9, kind: input, shape index: {}]   ;;  %s2901_s10 = inlined_call_operand.vmem [shape: f32[1,128], index: 10, kind: input, shape index: {}]   ;;  %s2902_s11 = inlined_call_operand.vmem [shape: f32[128,32], index: 11, kind: input, shape index: {}]   ;;  %s2903_s12 = inlined_call_operand.vmem [shape: f32[1,32], index: 12, kind: input, shape index: {}]   ;;  %s2904_s13 = inlined_call_operand.hbm [shape: f32[2,8,32], index: 13, kind: output, shape index: {}]  }
   0x1   :  { %19 = vsyncpa [#allocation5], 0  ;;  %s2439_s25 = smov [#allocation3]   ;;  %s2391_s29 = scalar_lea.hbm %s2891_s0, 256 }
   0x2   :  { %s25_s26 = sshll.u32 %s2439_s25, 4  ;;  %p2392_p0 = scmp.ne.s32.totalorder %s2891_s0, %s2391_s29  ;;  %s26_s26 = int_to_ptr.vmem [resolvable:$true] %s25_s26 }
   0x3   :  { %p2395_p1 = scmp.lt.u32.totalorder %s2391_s29, %s2891_s0 }
   0x5   :  { %p2397_p2 = pnand %p2395_p1, %p2392_p0 }
   0x7   :  { %2400 = shalt.err (!%p2397_p2)
}
   0x8   :  { %s2401_s17 = scalar_lea.vmem %s26_s26, 256  ;;  %p2406_p4 = scmp.lt.s32.totalorder %s26_s26, %s26_s26 }
   0x9   :  { %p2402_p3 = scmp.ne.s32.totalorder %s26_s26, %s2401_s17  ;;  %p2407_p5 = scmp.lt.s32.totalorder %s2401_s17, %s2401_s17 }
   0xb   :  { %p2408_p6 = por %p2407_p5, %p2406_p4 }
   0xd   :  { %p2409_p7 = pnand %p2408_p6, %p2402_p3 }
   0xf   :  { %2412 = shalt.err (!%p2409_p7)
}
  0x10   :  { %s2440_s18 = smov 128   ;;  %s2441_s19 = smov 8  }
  0x11   :  { %31 = dma.hbm_to_vmem [thread:$0]  %s2891_s0, 256, %s26_s26, [#allocation4], %s2440_s18, %s2440_s18, %s2441_s19  }
  0x12   :  { %2435 = dma.done.wait [#allocation4], 256  }
  0x13   :  { %2436 = vsyncadd [#allocation4], 4294967040  ;;  %vm63_vm0 = vcmask 261120   ;;  %v59_v0 = vld [vmem:[#allocation3] sm:$0xff]  ;;  %v60_v1 = vld [vmem:[#allocation3 + $0x8] sm:$0xff]  ;;  %v2442_v21 = vmov 0.0   ;;  %v121_v49 = vlaneseq }
  0x14   :  { %v64_v2 = vsel %vm63_vm0, %v59_v0, 0.0  ;;  %v67_v3 = vsel %vm63_vm0, %v60_v1, 0.0  ;;  %v108_v14 = vld [vmem:[%s2894_s3 + $0x8] sm:$0xff]  ;;  %v111_v15 = vld [vmem:[%s2894_s3 + $0x20] sm:$0xff]  ;;  %v110_v18 = vld [vmem:[%s2894_s3 + $0x18] sm:$0xff]  ;;  %206 = vmatprep.mubr.f32.mxu0 %v2442_v21  ;;  %2139 = vmatprep.subr.mxu1 %v2442_v21  ;;  %vm2443_vm1 = vmmov 0  }
  0x15   :  { %65 = vadd.xlane.f32.xlu0 %v64_v2  ;;  %v107_v16 = vld [vmem:[%s2894_s3] sm:$0xff]  ;;  %v2276_v17 = vpack.c.bf16 %v111_v15, %v108_v14  ;;  %v114_v19 = vld [vmem:[%s2894_s3 + $0x38] sm:$0xff]  ;;  %v117_v20 = vld [vmem:[%s2894_s3 + $0x50] sm:$0xff]  ;;  %2141 = vmatprep.mubr.msk.f32.mxu1 %vm2443_vm1, %v2442_v21  ;;  %v122_v50 = vshrl.u32 %v121_v49, 7  ;;  %vm296_vm2 = vcmask 64512   ;;  %s2446_s16 = smov 104  }
  0x16   :  { %v2278_v22 = vpack.c.bf16 %v110_v18, %v107_v16  ;;  %v2280_v23 = vpack.c.bf16 %v117_v20, %v114_v19  ;;  %v113_v24 = vld [vmem:[%s2894_s3 + $0x30] sm:$0xff]  ;;  %v116_v25 = vld [vmem:[%s2894_s3 + $0x48] sm:$0xff]  ;;  %v2021_v37 = vld [vmem:[%s2892_s1] ss:$0 sm:$0xff]  ;;  %s2447_s17 = smov 16   ;;  %vm971_vm3 = vcmask 130112  }
  0x17   :  { %2277 = vmatprep.subr.bf16.mxu0 %v2276_v17  ;;  %v2282_v26 = vpack.c.bf16 %v116_v25, %v113_v24  ;;  %v109_v27 = vld [vmem:[%s2894_s3 + $0x10] sm:$0xff]  ;;  %v112_v28 = vld [vmem:[%s2894_s3 + $0x28] sm:$0xff]  ;;  %v2022_v39 = vld [vmem:[%s2893_s2] ss:$0 sm:$0xff]  ;;  %v123_v51 = vsub.s32 0, %v122_v50  ;;  %v127_v53 = vsub.s32 1, %v122_v50 }
  0x18   :  { %2279 = vmatpush1.bf16.msra.mxu0 %v2278_v22  ;;  %v2284_v29 = vpack.c.bf16 %v112_v28, %v109_v27  ;;  %v115_v40 = vld [vmem:[%s2894_s3 + $0x40] sm:$0xff]  ;;  %v118_v41 = vld [vmem:[%s2894_s3 + $0x58] sm:$0xff]  ;;  %v131_v59 = vsub.s32 2, %v122_v50  ;;  %s2444_s3 = smov 120   ;;  %vm1318_vm4 = vcmask 195712   ;;  %s2448_s27 = smov 24  }
  0x19   :  { %68 = vadd.xlane.f32.xlu0 %v67_v3  ;;  %2281 = vmatprep.subr.bf16.mxu0 %v2280_v23  ;;  %v2288_v46 = vpack.c.bf16 %v118_v41, %v115_v40  ;;  %v119_v52 = vld [vmem:[%s2895_s4] sm:$0x7]  ;;  %s2445_s4 = smov 112   ;;  %vm1665_vm5 = vcmask 261312  }
  0x1a   :  { %v124_v54 = vrot.slane %v119_v52, %v123_v51  ;;  %v128_v55 = vrot.slane %v119_v52, %v127_v53 }
  0x1c   :  { %2283 = vmatpush1.bf16.msra.mxu0 %v2282_v26 }
  0x1d   :  { %2285 = vmatprep.subr.bf16.mxu0 %v2284_v29 }
  0xa2   :  { %v66_v4 = vpop.xlane.xlu0 %65 }
  0xa3   :  { %v71_v5 = vmul.f32 0.03125, %v66_v4 }
  0xa5   :  { %v73_v6 = vsub.f32 %v59_v0, %v71_v5 }
  0xa6   :  { %v69_v7 = vpop.xlane.xlu0 %68 }
  0xa7   :  { %v72_v8 = vmul.f32 0.03125, %v69_v7  ;;  %v75_v9 = vmul.f32 %v73_v6, %v73_v6 }
  0xa9   :  { %v74_v10 = vsub.f32 %v60_v1, %v72_v8  ;;  %v77_v11 = vsel %vm63_vm0, %v75_v9, 0.0  ;;  %v132_v1 = vrot.slane %v119_v52, %v131_v59 }
  0xaa   :  { %78 = vadd.xlane.f32.xlu1 %v77_v11 }
  0xab   :  { %v76_v12 = vmul.f32 %v74_v10, %v74_v10 }
  0xad   :  { %v80_v13 = vsel %vm63_vm0, %v76_v12, 0.0 }
  0xae   :  { %81 = vadd.xlane.f32.xlu1 %v80_v13 }
 0x137   :  { %v79_v30 = vpop.xlane.xlu1 %78 }
 0x138   :  { %v83_v31 = vmul.f32 0.03125, %v79_v30 }
 0x13a   :  { %v85_v32 = vadd.f32 1e-05, %v83_v31 }
 0x13b   :  { %v82_v33 = vpop.xlane.xlu1 %81 }
 0x13c   :  { %2351 = vrsqrt.f32 %v85_v32  ;;  %v84_v34 = vmul.f32 0.03125, %v82_v33 }
 0x13e   :  { %v86_v35 = vadd.f32 1e-05, %v84_v34 }
 0x140   :  { %2353 = vrsqrt.f32 %v86_v35 }
 0x146   :  { %v2352_v36 = vpop.eup %2351 }
 0x147   :  { %v89_v38 = vmul.f32 %v2352_v36, %v73_v6 }
 0x149   :  { %v97_v42 = vmul.f32 %v2021_v37, %v89_v38 }
 0x14a   :  { %v2354_v43 = vpop.eup %2353 }
 0x14b   :  { %v2583_v44 = vadd.f32 %v2022_v39, %v97_v42  ;;  %v90_v45 = vmul.f32 %v2354_v43, %v74_v10 }
 0x14d   :  { %2023 = vmatmul.mubr.msk.f32.vlgmr.msra.gmra.mrb[0].mxu0 %vm63_vm0, %v2583_v44  ;;  %v98_v47 = vmul.f32 %v2021_v37, %v90_v45 }
 0x14e   :  { %2287 = vmatpush3.bf16.msra.mxu0 %v2284_v29  ;;  %212 = vmatprep.mubr.f32.mxu0 %v2442_v21 }
 0x14f   :  { %v2588_v48 = vadd.f32 %v2022_v39, %v98_v47  ;;  %2289 = vmatprep.subr.bf16.mxu0 %v2288_v46 }
 0x151   :  { %2024 = vmatmul.mubr.msk.f32.gmra.mrb[2].mxu0 %vm63_vm0, %v2588_v48 }
 0x152   :  { %2291 = vmatpush3.bf16.msra.mxu0 %v2288_v46  ;;  %2136 = vmatprep.mubr.msk.f32.mxu0 %vm63_vm0, %v2583_v44 }
 0x153   :  { %2144 = vmatprep.subr.mxu0 %v2442_v21 }
 0x155   :  { %2137 = vmatmul.mubr.msk.f32.vlgmr.msra.gmra.mrb[4].mxu0 %vm63_vm0, %v2588_v48 }
 0x156   :  { %2146 = vmatprep.mubr.msk.f32.mxu0 %vm2443_vm1, %v2442_v21 }
 0x220   :  { %v208_v56 = vpop.f32.mrb[0].mxu0 }
 0x221   :  { %v209_v57 = vadd.f32 %v208_v56, %v124_v54  ;;  %v210_v58 = vpop.f32.mrb[1].mxu0 }
 0x222   :  { %v2604_v60 = vadd.f32 %v210_v58, %v128_v55 }
 0x223   :  { %v2608_v62 = vmul.f32 0.35355338, %v209_v57 }
 0x224   :  { %v214_v61 = vpop.f32.mrb[2].mxu0  ;;  %2140 = vmatpush3.xpose.msk.msra.mxu1 %vm296_vm2, %v2604_v60 }
 0x225   :  { %v215_v63 = vadd.f32 %v214_v61, %v124_v54  ;;  %v216_v0 = vpop.f32.mrb[3].mxu0  ;;  %2149 = vmatprep.subr.mxu1 %v2442_v21 }
 0x226   :  { %v2611_v2 = vadd.f32 %v216_v0, %v128_v55 }
 0x227   :  { %2142 = vmatmul.mubr.msk.f32.vlgmr.msra.gmra.mrb[0].mxu1 %vm296_vm2, %v2608_v62  ;;  %v2618_v4 = vmul.f32 0.35355338, %v215_v63 }
 0x228   :  { %v2138_v3 = vpop.f32.mrb[4].mxu0  ;;  %705 = vrot.lane.b32.xlu1 %v2611_v2, %s2444_s3  ;;  %2145 = vmatpush3.xpose.msk.msra.mxu0 %vm296_vm2, %v2611_v2 }
 0x229   :  { %v2620_v5 = vadd.f32 %v2138_v3, %v132_v1  ;;  %v285_v6 = vpop.f32.mrb[5].mxu0  ;;  %2154 = vmatprep.subr.mxu0 %v2442_v21  ;;  %2151 = vmatprep.mubr.msk.f32.mxu1 %vm2443_vm1, %v2442_v21 }
 0x22a   :  { %v2625_v7 = vadd.f32 %v285_v6, %v132_v1 }
 0x22b   :  { %2147 = vmatmul.mubr.msk.f32.vlgmr.msra.gmra.mrb[6].mxu0 %vm296_vm2, %v2618_v4 }
 0x22c   :  { %2150 = vmatpush3.msra.mxu1 %v2625_v7  ;;  %625 = vrot.lane.b32.xlu1 %v2608_v62, %s2444_s3 }
 0x22d   :  { %2155 = vmatpush3.msra.mxu0 %v2620_v5  ;;  %2159 = vmatprep.subr.mxu1 %v2442_v21 }
 0x22e   :  { %2156 = vmatprep.mubr.msk.f32.mxu0 %vm2443_vm1, %v2442_v21  ;;  %2164 = vmatprep.subr.mxu0 %v2442_v21 }
 0x29a   :  { %v706_v14 = vpop.permute.xlu1 %705 }
 0x29e   :  { %v626_v15 = vpop.permute.xlu1 %625 }
 0x2fa   :  { %v369_v8 = vpop.f32.mrb[0].mxu1 }
 0x2fb   :  { %v2143_v9 = vpop.f32.mrb[1].mxu1  ;;  %v449_v10 = vsel %vm296_vm2, %v369_v8, -inf }
 0x2fc   :  { %450 = vmax.xlane.f32.xlu0 %v449_v10 }
 0x2fe   :  { %v445_v11 = vpop.f32.mrb[6].mxu0 }
 0x2ff   :  { %v2148_v12 = vpop.f32.mrb[7].mxu0  ;;  %v452_v13 = vsel %vm296_vm2, %v445_v11, -inf }
 0x300   :  { %453 = vmax.xlane.f32.xlu1 %v452_v13 }
 0x311   :  { %703 = vrot.lane.b32.xlu1 %v2618_v4, %s2444_s3 }
 0x312   :  { %627 = vrot.lane.b32.xlu0 %v2604_v60, %s2444_s3 }
 0x315   :  { %885 = vrot.lane.b32.xlu1 %v2620_v5, %s2444_s3 }
 0x316   :  { %808 = vrot.lane.b32.xlu0 %v2625_v7, %s2444_s3 }
 0x319   :  { %1054 = vrot.lane.b32.xlu1 %v2611_v2, %s2445_s4 }
 0x389   :  { %v451_v16 = vpop.xlane.xlu0 %450 }
 0x38a   :  { %v455_v17 = vsub.f32 %v369_v8, %v451_v16 }
 0x38c   :  { %v457_v18 = vmul.f32 1.442695, %v455_v17 }
 0x38d   :  { %v454_v19 = vpop.xlane.xlu1 %453  ;;  %v628_v23 = vpop.permute.xlu0 %627 }
 0x38e   :  { %2355 = vpow2.f32 %v457_v18  ;;  %v456_v20 = vsub.f32 %v445_v11, %v454_v19 }
 0x390   :  { %v459_v22 = vmul.f32 1.442695, %v456_v20 }
 0x391   :  { %v704_v25 = vpop.permute.xlu1 %703  ;;  %v809_v27 = vpop.permute.xlu0 %808 }
 0x392   :  { %2357 = vpow2.f32 %v459_v22 }
 0x395   :  { %v886_v28 = vpop.permute.xlu1 %885 }
 0x398   :  { %v2644_v24 = vpop.eup %2355 }
 0x399   :  { %2152 = vmatmul.mubr.msk.f32.vlgmr.msra.gmra.mrb[2].mxu1 %vm296_vm2, %v2644_v24  ;;  %v1055_v39 = vpop.permute.xlu1 %1054 }
 0x39a   :  { %2160 = vmatpush3.xpose.msk.msra.mxu1 %vm296_vm2, %v628_v23  ;;  %2161 = vmatprep.mubr.msk.f32.mxu1 %vm2443_vm1, %v2442_v21 }
 0x39b   :  { %2169 = vmatprep.subr.mxu1 %v2442_v21 }
 0x39c   :  { %v2652_v26 = vpop.eup %2357 }
 0x39d   :  { %2157 = vmatmul.mubr.msk.f32.vlgmr.msra.gmra.mrb[8].mxu0 %vm296_vm2, %v2652_v26  ;;  %2162 = vmatmul.mubr.msk.f32.vlgmr.msra.gmra.mrb[4].mxu1 %vm296_vm2, %v626_v15 }
 0x39e   :  { %2165 = vmatpush3.xpose.msk.msra.mxu0 %vm296_vm2, %v706_v14  ;;  %2170 = vmatpush3.msra.mxu1 %v809_v27 }
 0x39f   :  { %2166 = vmatprep.mubr.msk.f32.mxu0 %vm2443_vm1, %v2442_v21  ;;  %2174 = vmatprep.subr.mxu0 %v2442_v21 }
 0x3a0   :  { %2171 = vmatprep.mubr.msk.f32.mxu1 %vm2443_vm1, %v2442_v21  ;;  %2179 = vmatprep.subr.mxu1 %v2442_v21 }
 0x3a1   :  { %2167 = vmatmul.mubr.msk.f32.vlgmr.msra.gmra.mrb[10].mxu0 %vm296_vm2, %v704_v25 }
 0x3a2   :  { %2175 = vmatpush3.msra.mxu0 %v886_v28  ;;  %2176 = vmatprep.mubr.msk.f32.mxu0 %vm2443_vm1, %v2442_v21 }
 0x3a3   :  { %2184 = vmatprep.subr.mxu0 %v2442_v21 }
 0x46c   :  { %v2668_v29 = vpop.f32.mrb[2].mxu1 }
 0x46d   :  { %v2153_v30 = vpop.f32.mrb[3].mxu1 }
 0x470   :  { %v2670_v31 = vpop.f32.mrb[8].mxu0  ;;  %v699_v32 = vpop.f32.mrb[4].mxu1 }
 0x471   :  { %v2158_v33 = vpop.f32.mrb[9].mxu0  ;;  %v2163_v34 = vpop.f32.mrb[5].mxu1  ;;  %v781_v35 = vsel %vm296_vm2, %v699_v32, -inf }
 0x472   :  { %782 = vmax.xlane.f32.xlu0 %v781_v35 }
 0x474   :  { %v777_v36 = vpop.f32.mrb[10].mxu0 }
 0x475   :  { %v2168_v37 = vpop.f32.mrb[11].mxu0  ;;  %v784_v38 = vsel %vm296_vm2, %v777_v36, -inf }
 0x476   :  { %785 = vmax.xlane.f32.xlu1 %v784_v38 }
 0x487   :  { %1052 = vrot.lane.b32.xlu1 %v2618_v4, %s2445_s4 }
 0x488   :  { %976 = vrot.lane.b32.xlu0 %v2604_v60, %s2445_s4 }
 0x48b   :  { %1232 = vrot.lane.b32.xlu1 %v2620_v5, %s2445_s4 }
 0x48c   :  { %974 = vrot.lane.b32.xlu0 %v2608_v62, %s2445_s4 }
 0x48f   :  { %1401 = vrot.lane.b32.xlu1 %v2611_v2, %s2446_s16 }
 0x490   :  { %1156 = vrot.lane.b32.xlu0 %v2625_v7, %s2445_s4 }
 0x4ff   :  { %v783_v40 = vpop.xlane.xlu0 %782 }
 0x500   :  { %v787_v41 = vsub.f32 %v699_v32, %v783_v40 }
 0x502   :  { %v789_v42 = vmul.f32 1.442695, %v787_v41 }
 0x503   :  { %v786_v43 = vpop.xlane.xlu1 %785  ;;  %v977_v47 = vpop.permute.xlu0 %976 }
 0x504   :  { %2359 = vpow2.f32 %v789_v42  ;;  %v788_v45 = vsub.f32 %v777_v36, %v786_v43  ;;  %v461_v43 = vsel %vm296_vm2, %v2644_v24, 0.0 }
 0x506   :  { %v791_v46 = vmul.f32 1.442695, %v788_v45  ;;  %v464_v45 = vsel %vm296_vm2, %v2652_v26, 0.0 }
 0x507   :  { %v975_v49 = vpop.permute.xlu0 %974  ;;  %v1053_v51 = vpop.permute.xlu1 %1052 }
 0x508   :  { %2361 = vpow2.f32 %v791_v46 }
 0x50b   :  { %v1157_v53 = vpop.permute.xlu0 %1156  ;;  %v1233_v54 = vpop.permute.xlu1 %1232 }
 0x50e   :  { %v2686_v50 = vpop.eup %2359 }
 0x50f   :  { %2172 = vmatmul.mubr.msk.f32.vlgmr.msra.gmra.mrb[6].mxu1 %vm296_vm2, %v2686_v50  ;;  %v1402_v3 = vpop.permute.xlu1 %1401 }
 0x510   :  { %2180 = vmatpush3.xpose.msk.msra.mxu1 %vm296_vm2, %v977_v47  ;;  %2181 = vmatprep.mubr.msk.f32.mxu1 %vm2443_vm1, %v2442_v21 }
 0x511   :  { %2189 = vmatprep.subr.mxu1 %v2442_v21 }
 0x512   :  { %v2694_v52 = vpop.eup %2361 }
 0x513   :  { %2177 = vmatmul.mubr.msk.f32.vlgmr.msra.gmra.mrb[12].mxu0 %vm296_vm2, %v2694_v52  ;;  %2182 = vmatmul.mubr.msk.f32.vlgmr.msra.gmra.mrb[8].mxu1 %vm296_vm2, %v975_v49  ;;  %v796_v28 = vsel %vm296_vm2, %v2694_v52, 0.0 }
 0x514   :  { %2185 = vmatpush3.xpose.msk.msra.mxu0 %vm296_vm2, %v1055_v39  ;;  %2190 = vmatpush3.msra.mxu1 %v1157_v53 }
 0x515   :  { %2186 = vmatprep.mubr.msk.f32.mxu0 %vm2443_vm1, %v2442_v21  ;;  %2194 = vmatprep.subr.mxu0 %v2442_v21 }
 0x516   :  { %2191 = vmatprep.mubr.msk.f32.mxu1 %vm2443_vm1, %v2442_v21  ;;  %2199 = vmatprep.subr.mxu1 %v2442_v21 }
 0x517   :  { %2187 = vmatmul.mubr.msk.f32.vlgmr.msra.gmra.mrb[14].mxu0 %vm296_vm2, %v1053_v51 }
 0x518   :  { %2195 = vmatpush3.msra.mxu0 %v1233_v54  ;;  %2196 = vmatprep.mubr.msk.f32.mxu0 %vm2443_vm1, %v2442_v21 }
 0x519   :  { %2204 = vmatprep.subr.mxu0 %v2442_v21 }
 0x5e2   :  { %v2710_v55 = vpop.f32.mrb[6].mxu1 }
 0x5e3   :  { %v2173_v56 = vpop.f32.mrb[7].mxu1 }
 0x5e6   :  { %v2712_v57 = vpop.f32.mrb[12].mxu0  ;;  %v1048_v58 = vpop.f32.mrb[8].mxu1 }
 0x5e7   :  { %v2178_v59 = vpop.f32.mrb[13].mxu0  ;;  %v2183_v61 = vpop.f32.mrb[9].mxu1  ;;  %v1130_v63 = vsel %vm296_vm2, %v1048_v58, -inf }
 0x5e8   :  { %1131 = vmax.xlane.f32.xlu0 %v1130_v63 }
 0x5ea   :  { %v1126_v0 = vpop.f32.mrb[14].mxu0 }
 0x5eb   :  { %v2188_v1 = vpop.f32.mrb[15].mxu0  ;;  %v1133_v2 = vsel %vm296_vm2, %v1126_v0, -inf }
 0x5ec   :  { %1134 = vmax.xlane.f32.xlu1 %v1133_v2 }
 0x5fd   :  { %1399 = vrot.lane.b32.xlu1 %v2618_v4, %s2446_s16 }
 0x5fe   :  { %1323 = vrot.lane.b32.xlu0 %v2604_v60, %s2446_s16 }
 0x602   :  { %1321 = vrot.lane.b32.xlu0 %v2608_v62, %s2446_s16 }
 0x675   :  { %v1132_v6 = vpop.xlane.xlu0 %1131 }
 0x676   :  { %v1136_v8 = vsub.f32 %v1048_v58, %v1132_v6 }
 0x678   :  { %v1138_v9 = vmul.f32 1.442695, %v1136_v8 }
 0x679   :  { %v1135_v10 = vpop.xlane.xlu1 %1134  ;;  %v1324_v13 = vpop.permute.xlu0 %1323 }
 0x67a   :  { %2363 = vpow2.f32 %v1138_v9  ;;  %v1137_v11 = vsub.f32 %v1126_v0, %v1135_v10 }
 0x67c   :  { %v1140_v12 = vmul.f32 1.442695, %v1137_v11 }
 0x67d   :  { %v1322_v62 = vpop.permute.xlu0 %1321  ;;  %v1400_v4 = vpop.permute.xlu1 %1399 }
 0x67e   :  { %2365 = vpow2.f32 %v1140_v12 }
 0x684   :  { %v2364_v14 = vpop.eup %2363 }
 0x685   :  { %2192 = vmatmul.mubr.msk.f32.vlgmr.msra.gmra.mrb[10].mxu1 %vm296_vm2, %v2364_v14  ;;  %v1142_v30 = vsel %vm296_vm2, %v2364_v14, 0.0 }
 0x686   :  { %2200 = vmatpush3.xpose.msk.msra.mxu1 %vm296_vm2, %v1324_v13  ;;  %2201 = vmatprep.mubr.msk.f32.mxu1 %vm2443_vm1, %v2442_v21 }
 0x687   :  { %2209 = vmatprep.subr.mxu1 %v2442_v21 }
 0x688   :  { %v2366_v60 = vpop.eup %2365 }
 0x689   :  { %2197 = vmatmul.mubr.msk.f32.vlgmr.msra.gmra.mrb[16].mxu0 %vm296_vm2, %v2366_v60  ;;  %2202 = vmatmul.mubr.msk.f32.vlgmr.msra.gmra.mrb[12].mxu1 %vm296_vm2, %v1322_v62  ;;  %v1145_v32 = vsel %vm296_vm2, %v2366_v60, 0.0 }
 0x68a   :  { %2205 = vmatpush3.xpose.msk.msra.mxu0 %vm296_vm2, %v1402_v3  ;;  %2206 = vmatprep.mubr.msk.f32.mxu0 %vm2443_vm1, %v2442_v21 }
 0x68b   :  { %2214 = vmatprep.subr.mxu0 %v2442_v21  ;;  %2211 = vmatprep.mubr.msk.f32.mxu1 %vm2443_vm1, %v2442_v21 }
 0x68d   :  { %2207 = vmatmul.mubr.msk.f32.vlgmr.msra.gmra.mrb[18].mxu0 %vm296_vm2, %v1400_v4 }
 0x68e   :  { %2216 = vmatprep.mubr.msk.f32.mxu0 %vm2443_vm1, %v2442_v21  ;;  %v793_v21 = vsel %vm296_vm2, %v2686_v50, 0.0 }
 0x758   :  { %v2738_v15 = vpop.f32.mrb[10].mxu1 }
 0x759   :  { %v2193_v16 = vpop.f32.mrb[11].mxu1 }
 0x75c   :  { %v2740_v17 = vpop.f32.mrb[16].mxu0  ;;  %v1395_v18 = vpop.f32.mrb[12].mxu1 }
 0x75d   :  { %v2198_v19 = vpop.f32.mrb[17].mxu0  ;;  %v2203_v20 = vpop.f32.mrb[13].mxu1  ;;  %v1477_v22 = vsel %vm296_vm2, %v1395_v18, -inf }
 0x75e   :  { %1478 = vmax.xlane.f32.xlu0 %v1477_v22 }
 0x760   :  { %v1473_v23 = vpop.f32.mrb[18].mxu0 }
 0x761   :  { %v2208_v25 = vpop.f32.mrb[19].mxu0  ;;  %v1480_v27 = vsel %vm296_vm2, %v1473_v23, -inf }
 0x762   :  { %1481 = vmax.xlane.f32.xlu1 %v1480_v27 }
 0x773   :  { %1579 = vrot.lane.b32.xlu1 %v2620_v5, %s2446_s16 }
 0x774   :  { %1503 = vrot.lane.b32.xlu0 %v2625_v7, %s2446_s16 }
 0x793   :  { %794 = vadd.xlane.f32.xlu0 %v793_v21 }
 0x797   :  { %797 = vadd.xlane.f32.xlu1 %v796_v28  ;;  %1143 = vadd.xlane.f32.xlu0 %v1142_v30  ;;  %v1671_v30 = vld [vmem:[%s2896_s5 + $0x8] sm:$0xff] }
 0x79b   :  { %1146 = vadd.xlane.f32.xlu0 %v1145_v32 }
 0x7eb   :  { %v1479_v33 = vpop.xlane.xlu0 %1478 }
 0x7ec   :  { %v1483_v34 = vsub.f32 %v1395_v18, %v1479_v33  ;;  %v1672_v33 = vld [vmem:[%s2896_s5 + $0x10] sm:$0xff] }
 0x7ee   :  { %v1485_v5 = vmul.f32 1.442695, %v1483_v34  ;;  %v1673_v34 = vld [vmem:[%s2896_s5 + $0x18] sm:$0xff] }
 0x7ef   :  { %v1482_v35 = vpop.xlane.xlu1 %1481  ;;  %v1504_v36 = vpop.permute.xlu0 %1503 }
 0x7f0   :  { %2367 = vpow2.f32 %v1485_v5  ;;  %v1484_v7 = vsub.f32 %v1473_v23, %v1482_v35  ;;  %2210 = vmatpush3.msra.mxu1 %v1504_v36  ;;  %v2296_v36 = vpack.c.bf16 %v1673_v34, %v1672_v33 }
 0x7f2   :  { %v1487_v37 = vmul.f32 1.442695, %v1484_v7 }
 0x7f3   :  { %v1580_v38 = vpop.permute.xlu1 %1579 }
 0x7f4   :  { %2369 = vpow2.f32 %v1487_v37  ;;  %2215 = vmatpush3.msra.mxu0 %v1580_v38 }
 0x7fa   :  { %v2368_v39 = vpop.eup %2367 }
 0x7fb   :  { %2212 = vmatmul.mubr.msk.f32.vlgmr.msra.gmra.mrb[14].mxu1 %vm296_vm2, %v2368_v39  ;;  %v1489_v40 = vsel %vm296_vm2, %v2368_v39, 0.0 }
 0x7fc   :  { %1490 = vadd.xlane.f32.xlu0 %v1489_v40 }
 0x7fe   :  { %v2370_v41 = vpop.eup %2369 }
 0x7ff   :  { %2217 = vmatmul.mubr.msk.f32.vlgmr.msra.gmra.mrb[20].mxu0 %vm296_vm2, %v2370_v41  ;;  %v1492_v42 = vsel %vm296_vm2, %v2370_v41, 0.0 }
 0x800   :  { %1493 = vadd.xlane.f32.xlu1 %v1492_v42  ;;  %462 = vadd.xlane.f32.xlu0 %v461_v43 }
 0x804   :  { %465 = vadd.xlane.f32.xlu1 %v464_v45 }
 0x820   :  { %v795_v46 = vpop.xlane.xlu0 %794 }
 0x821   :  { %2371 = vrcp.f32 %v795_v46 }
 0x824   :  { %v798_v47 = vpop.xlane.xlu1 %797  ;;  %v1144_v49 = vpop.xlane.xlu0 %1143 }
 0x825   :  { %2373 = vrcp.f32 %v798_v47 }
 0x826   :  { %2375 = vrcp.f32 %v1144_v49 }
 0x828   :  { %v1147_v50 = vpop.xlane.xlu0 %1146 }
 0x829   :  { %2377 = vrcp.f32 %v1147_v50 }
 0x82b   :  { %v2372_v51 = vpop.eup %2371 }
 0x82c   :  { %v801_v52 = vmul.f32 %v2372_v51, %v795_v46 }
 0x82e   :  { %v803_v53 = vsub.f32 2.0, %v801_v52 }
 0x82f   :  { %v2374_v54 = vpop.eup %2373 }
 0x830   :  { %v2376_v56 = vpop.eup %2375  ;;  %v802_v24 = vmul.f32 %v2374_v54, %v798_v47  ;;  %v805_v58 = vmul.f32 %v2372_v51, %v803_v53  ;;  %v2051_v51 = vld [vmem:[%s2897_s6] ss:$0 sm:$0xff] }
 0x831   :  { %v1150_v59 = vmul.f32 %v2376_v56, %v1144_v49 }
 0x832   :  { %v804_v61 = vsub.f32 2.0, %v802_v24  ;;  %v961_v26 = vmul.f32 %v2710_v55, %v805_v58 }
 0x833   :  { %v2378_v63 = vpop.eup %2377  ;;  %v1152_v0 = vsub.f32 2.0, %v1150_v59 }
 0x834   :  { %v1151_v1 = vmul.f32 %v2378_v63, %v1147_v50  ;;  %965 = vrot.lane.b32.xlu0 %v961_v26, %s2441_s19  ;;  %v806_v2 = vmul.f32 %v2374_v54, %v804_v61 }
 0x835   :  { %v1154_v3 = vmul.f32 %v2376_v56, %v1152_v0 }
 0x836   :  { %v1153_v6 = vsub.f32 2.0, %v1151_v1  ;;  %v962_v8 = vmul.f32 %v2712_v57, %v806_v2 }
 0x837   :  { %v1308_v10 = vmul.f32 %v2738_v15, %v1154_v3 }
 0x838   :  { %967 = vrot.lane.b32.xlu1 %v962_v8, %s2441_s19  ;;  %v1155_v9 = vmul.f32 %v2378_v63, %v1153_v6 }
 0x83a   :  { %v1309_v11 = vmul.f32 %v2740_v17, %v1155_v9  ;;  %v1808_v9 = vld [vmem:[%s2900_s9] sm:$0xff] }
 0x83c   :  { %1312 = vrot.lane.b32.xlu1 %v1308_v10, %s2447_s17  ;;  %v1809_v10 = vld [vmem:[%s2900_s9 + $0x8] sm:$0xff] }
 0x840   :  { %1314 = vrot.lane.b32.xlu1 %v1309_v11, %s2447_s17  ;;  %v2300_v11 = vpack.c.bf16 %v1809_v10, %v1808_v9 }
 0x889   :  { %v1491_v55 = vpop.xlane.xlu0 %1490 }
 0x88d   :  { %v1494_v12 = vpop.xlane.xlu1 %1493  ;;  %v463_v13 = vpop.xlane.xlu0 %462 }
 0x88e   :  { %2379 = vrcp.f32 %v463_v13 }
 0x891   :  { %v466_v14 = vpop.xlane.xlu1 %465 }
 0x892   :  { %2381 = vrcp.f32 %v466_v14 }
 0x893   :  { %2383 = vrcp.f32 %v1491_v55 }
 0x894   :  { %2385 = vrcp.f32 %v1494_v12 }
 0x898   :  { %v2380_v60 = vpop.eup %2379 }
 0x899   :  { %v469_v62 = vmul.f32 %v2380_v60, %v463_v13 }
 0x89b   :  { %v471_v57 = vsub.f32 2.0, %v469_v62  ;;  %v1904_v62 = vld [vmem:[%s2902_s11 + $0x10] sm:$0xff] }
 0x89c   :  { %v2382_v4 = vpop.eup %2381 }
 0x89d   :  { %v470_v16 = vmul.f32 %v2382_v4, %v466_v14  ;;  %v473_v18 = vmul.f32 %v2380_v60, %v471_v57  ;;  %v1902_v14 = vld [vmem:[%s2902_s11] sm:$0xff]  ;;  %v1903_v60 = vld [vmem:[%s2902_s11 + $0x8] sm:$0xff]  ;;  %v1905_v57 = vld [vmem:[%s2902_s11 + $0x18] sm:$0xff] }
 0x89f   :  { %v472_v19 = vsub.f32 2.0, %v470_v16  ;;  %v621_v15 = vmul.f32 %v2668_v29, %v473_v18  ;;  %v2384_v29 = vpop.eup %2383  ;;  %v2312_v16 = vpack.c.bf16 %v1905_v57, %v1904_v62  ;;  %v1906_v18 = vld [vmem:[%s2902_s11 + $0x20] sm:$0xff] }
 0x8a0   :  { %v1497_v21 = vmul.f32 %v2384_v29, %v1491_v55  ;;  %v2386_v28 = vpop.eup %2385  ;;  %v1810_v55 = vld [vmem:[%s2900_s9 + $0x10] sm:$0xff] }
 0x8a1   :  { %v474_v20 = vmul.f32 %v2382_v4, %v472_v19  ;;  %623 = vst.msk [vmem:[#allocation2] sm:$0xff] %vm296_vm2, %v621_v15  ;;  %v1498_v35 = vmul.f32 %v2386_v28, %v1494_v12  ;;  %v1811_v12 = vld [vmem:[%s2900_s9 + $0x18] sm:$0xff]  ;;  %v2308_v4 = vpack.c.bf16 %v1903_v60, %v1902_v14  ;;  %v1907_v19 = vld [vmem:[%s2902_s11 + $0x28] sm:$0xff] }
 0x8a2   :  { %v1499_v5 = vsub.f32 2.0, %v1497_v21  ;;  %v2304_v13 = vpack.c.bf16 %v1811_v12, %v1810_v55  ;;  %v2316_v15 = vpack.c.bf16 %v1907_v19, %v1906_v18  ;;  %v1913_v21 = vld [vmem:[%s2902_s11 + $0x58] sm:$0xff] }
 0x8a3   :  { %v622_v17 = vmul.f32 %v2670_v31, %v474_v20  ;;  %v1670_v31 = vld [vmem:[%s2896_s5] sm:$0xff]  ;;  %v1500_v7 = vsub.f32 2.0, %v1498_v35  ;;  %2309 = vmatprep.subr.bf16.mxu1 %v2308_v4  ;;  %v1908_v20 = vld [vmem:[%s2902_s11 + $0x30] sm:$0xff] }
 0x8a4   :  { %v2292_v32 = vpack.c.bf16 %v1671_v30, %v1670_v31  ;;  %v1501_v37 = vmul.f32 %v2384_v29, %v1499_v5  ;;  %2311 = vmatpush3.bf16.msra.mxu1 %v2308_v4  ;;  %v1912_v29 = vld [vmem:[%s2902_s11 + $0x50] sm:$0xff]  ;;  %v1914_v31 = vld [vmem:[%s2902_s11 + $0x60] sm:$0xff]  ;;  %v1915_v30 = vld [vmem:[%s2902_s11 + $0x68] sm:$0xff] }
 0x8a5   :  { %624 = vst.msk [vmem:[#allocation2 + $0x8] sm:$0xff] %vm296_vm2, %v622_v17  ;;  %v1502_v41 = vmul.f32 %v2386_v28, %v1500_v7  ;;  %2313 = vmatprep.subr.bf16.mxu1 %v2312_v16  ;;  %v1909_v17 = vld [vmem:[%s2902_s11 + $0x38] sm:$0xff]  ;;  %v2328_v28 = vpack.c.bf16 %v1913_v21, %v1912_v29 }
 0x8a6   :  { %v966_v22 = vpop.permute.xlu0 %965  ;;  %2293 = vmatprep.subr.bf16.mxu0 %v2292_v32 }
 0x8a7   :  { %972 = vst.msk [vmem:[#allocation2] sm:$0xff] %vm971_vm3, %v966_v22  ;;  %2295 = vmatpush3.bf16.msra.mxu0 %v2292_v32  ;;  %v2320_v22 = vpack.c.bf16 %v1909_v17, %v1908_v20  ;;  %v2332_v32 = vpack.c.bf16 %v1915_v30, %v1914_v31 }
 0x8a8   :  { %2297 = vmatprep.subr.bf16.mxu0 %v2296_v36  ;;  %2315 = vmatpush3.bf16.msra.mxu1 %v2312_v16 }
 0x8a9   :  { %2317 = vmatprep.subr.bf16.mxu1 %v2316_v15 }
 0x8aa   :  { %v968_v23 = vpop.permute.xlu1 %967 }
 0x8ab   :  { %973 = vst.msk [vmem:[#allocation2 + $0x8] sm:$0xff] %vm971_vm3, %v968_v23  ;;  %2299 = vmatpush3.bf16.msra.mxu0 %v2296_v36  ;;  %v1910_v23 = vld [vmem:[%s2902_s11 + $0x40] sm:$0xff] }
 0x8ac   :  { %2301 = vmatprep.subr.bf16.mxu0 %v2300_v11  ;;  %2319 = vmatpush3.bf16.msra.mxu1 %v2316_v15 }
 0x8ad   :  { %2321 = vmatprep.subr.bf16.mxu1 %v2320_v22 }
 0x8ae   :  { %v1313_v25 = vpop.permute.xlu1 %1312 }
 0x8af   :  { %1319 = vst.msk [vmem:[#allocation2] sm:$0xff] %vm1318_vm4, %v1313_v25  ;;  %v1911_v25 = vld [vmem:[%s2902_s11 + $0x48] sm:$0xff] }
 0x8b0   :  { %2323 = vmatpush3.bf16.msra.mxu1 %v2320_v22 }
 0x8b2   :  { %v1315_v27 = vpop.permute.xlu1 %1314 }
 0x8b3   :  { %1320 = vst.msk [vmem:[#allocation2 + $0x8] sm:$0xff] %vm1318_vm4, %v1315_v27  ;;  %v2324_v27 = vpack.c.bf16 %v1911_v25, %v1910_v23 }
 0x8b5   :  { %2325 = vmatprep.subr.bf16.mxu1 %v2324_v27 }
 0x8b6   :  { %2327 = vmatpush3.bf16.msra.mxu1 %v2324_v27 }
 0x8b7   :  { %2329 = vmatprep.subr.bf16.mxu1 %v2328_v28 }
 0x8ba   :  { %2331 = vmatpush3.bf16.msra.mxu1 %v2328_v28 }
 0x8bb   :  { %2333 = vmatprep.subr.bf16.mxu1 %v2332_v32 }
 0x8be   :  { %2335 = vmatpush3.bf16.msra.mxu1 %v2332_v32 }
 0x8ce   :  { %v1575_v38 = vpop.f32.mrb[14].mxu1 }
 0x8cf   :  { %v1655_v39 = vmul.f32 %v1575_v38, %v1501_v37  ;;  %v2213_v40 = vpop.f32.mrb[15].mxu1  ;;  %v2054_v38 = vld [vmem:[%s2898_s7] ss:$0 sm:$0xff] }
 0x8d0   :  { %v2055_v40 = vld [vmem:[%s2899_s8] ss:$0 sm:$0xff] }
 0x8d1   :  { %1659 = vrot.lane.b32.xlu0 %v1655_v39, %s2448_s27 }
 0x8d2   :  { %v1651_v42 = vpop.f32.mrb[20].mxu0 }
 0x8d3   :  { %v1656_v43 = vmul.f32 %v1651_v42, %v1502_v41  ;;  %v2218_v45 = vpop.f32.mrb[21].mxu0 }
 0x8d5   :  { %1661 = vrot.lane.b32.xlu1 %v1656_v43, %s2448_s27 }
 0x943   :  { %v1660_v46 = vpop.permute.xlu0 %1659 }
 0x944   :  { %1666 = vst.msk [vmem:[#allocation2] sm:$0xff] %vm1665_vm5, %v1660_v46 }
 0x947   :  { %v1662_v47 = vpop.permute.xlu1 %1661 }
 0x948   :  { %1667 = vst.msk [vmem:[#allocation2 + $0x8] sm:$0xff] %vm1665_vm5, %v1662_v47 }
 0x94b   :  { %v1668_v49 = vld [vmem:[#allocation2] sm:$0xff] }
 0x94c   :  { %2227 = vmatprep.mubr.msk.f32.mxu0 %vm63_vm0, %v1668_v49  ;;  %v1916_v49 = vld [vmem:[%s2902_s11 + $0x70] sm:$0xff] }
 0x94f   :  { %v1669_v50 = vld [vmem:[#allocation2 + $0x8] sm:$0xff] }
 0x950   :  { %2228 = vmatmul.mubr.msk.f32.vlgmr.msra.gmra.mrb[22].mxu0 %vm63_vm0, %v1669_v50  ;;  %v1917_v50 = vld [vmem:[%s2902_s11 + $0x78] sm:$0xff]  ;;  %s2449_s11 = smov [#allocation6]  }
 0x951   :  { %2303 = vmatpush3.bf16.msra.mxu0 %v2300_v11  ;;  %s2009_s6 = sshll.u32 %s2449_s11, 4  ;;  %s2010_s6 = int_to_ptr.vmem [resolvable:$true] %s2009_s6 }
 0x952   :  { %2305 = vmatprep.subr.bf16.mxu0 %v2304_v13  ;;  %p2418_p9 = scmp.lt.s32.totalorder %s2010_s6, %s2010_s6 }
 0x955   :  { %2307 = vmatpush3.bf16.msra.mxu0 %v2304_v13 }
 0xa23   :  { %v2229_v52 = vpop.f32.mrb[22].mxu0 }
 0xa24   :  { %v1759_v53 = vadd.f32 %v2229_v52, %v2051_v51  ;;  %v1753_v54 = vpop.f32.mrb[23].mxu0  ;;  %v2056_v52 = vld [vmem:[%s2901_s10] ss:$0 sm:$0xff]  ;;  %s2413_s10 = scalar_lea.vmem %s2010_s6, 256 }
 0xa25   :  { %v1754_v56 = vadd.f32 %v2051_v51, %v1753_v54  ;;  %v2336_v51 = vpack.c.bf16 %v1917_v50, %v1916_v49  ;;  %p2414_p8 = scmp.ne.s32.totalorder %s2010_s6, %s2413_s10  ;;  %p2419_p10 = scmp.lt.s32.totalorder %s2413_s10, %s2413_s10 }
 0xa26   :  { %v1763_v24 = vadd.f32 %v1759_v53, %v2588_v48 }
 0xa27   :  { %v1762_v58 = vadd.f32 %v1754_v56, %v2583_v44  ;;  %2337 = vmatprep.subr.bf16.mxu1 %v2336_v51  ;;  %p2420_p11 = por %p2419_p10, %p2418_p9 }
 0xa28   :  { %v1769_v59 = vsel %vm63_vm0, %v1763_v24, 0.0  ;;  %2339 = vmatpush3.bf16.msra.mxu1 %v2336_v51 }
 0xa29   :  { %1770 = vadd.xlane.f32.xlu1 %v1769_v59  ;;  %v1766_v61 = vsel %vm63_vm0, %v1762_v58, 0.0  ;;  %p2421_p12 = pnand %p2420_p11, %p2414_p8 }
 0xa2a   :  { %1767 = vadd.xlane.f32.xlu0 %v1766_v61  ;;  %v2059_v61 = vld [vmem:[%s2903_s12] ss:$0 sm:$0xff] }
 0xab6   :  { %v1771_v26 = vpop.xlane.xlu1 %1770 }
 0xab7   :  { %v1773_v63 = vmul.f32 0.03125, %v1771_v26  ;;  %v1768_v0 = vpop.xlane.xlu0 %1767 }
 0xab8   :  { %v1772_v1 = vmul.f32 0.03125, %v1768_v0 }
 0xab9   :  { %v2793_v2 = vsub.f32 %v1763_v24, %v1773_v63 }
 0xaba   :  { %v1774_v3 = vsub.f32 %v1762_v58, %v1772_v1 }
 0xabb   :  { %v1777_v48 = vmul.f32 %v2793_v2, %v2793_v2 }
 0xabc   :  { %v1776_v6 = vmul.f32 %v1774_v3, %v1774_v3 }
 0xabd   :  { %v1781_v44 = vsel %vm63_vm0, %v1777_v48, 0.0 }
 0xabe   :  { %v1778_v8 = vsel %vm63_vm0, %v1776_v6, 0.0 }
 0xabf   :  { %1779 = vadd.xlane.f32.xlu0 %v1778_v8 }
 0xac3   :  { %1782 = vadd.xlane.f32.xlu0 %v1781_v44 }
 0xb4c   :  { %v1780_v33 = vpop.xlane.xlu0 %1779 }
 0xb4d   :  { %v1784_v34 = vmul.f32 0.03125, %v1780_v33 }
 0xb4f   :  { %v1786_v5 = vadd.f32 1e-05, %v1784_v34 }
 0xb50   :  { %v1783_v35 = vpop.xlane.xlu0 %1782 }
 0xb51   :  { %2387 = vrsqrt.f32 %v1786_v5  ;;  %v1785_v36 = vmul.f32 0.03125, %v1783_v35 }
 0xb53   :  { %v1787_v7 = vadd.f32 1e-05, %v1785_v36 }
 0xb55   :  { %2389 = vrsqrt.f32 %v1787_v7 }
 0xb5b   :  { %v2388_v37 = vpop.eup %2387 }
 0xb5c   :  { %v1790_v39 = vmul.f32 %v2388_v37, %v1774_v3 }
 0xb5e   :  { %v1798_v41 = vmul.f32 %v2054_v38, %v1790_v39 }
 0xb5f   :  { %v2390_v42 = vpop.eup %2389 }
 0xb60   :  { %v1791_v43 = vmul.f32 %v2390_v42, %v2793_v2  ;;  %v1806_v45 = vadd.f32 %v2055_v40, %v1798_v41 }
 0xb62   :  { %v1799_v46 = vmul.f32 %v2054_v38, %v1791_v43  ;;  %2238 = vmatprep.mubr.msk.f32.mxu0 %vm63_vm0, %v1806_v45 }
 0xb64   :  { %v1807_v47 = vadd.f32 %v2055_v40, %v1799_v46 }
 0xb66   :  { %2239 = vmatmul.mubr.msk.f32.vlgmr.msra.gmra.mrb[24].mxu0 %vm63_vm0, %v1807_v47 }
 0xc39   :  { %v2240_v53 = vpop.f32.mrb[24].mxu0 }
 0xc3a   :  { %v1897_v54 = vadd.f32 %v2240_v53, %v2056_v52  ;;  %v1891_v56 = vpop.f32.mrb[25].mxu0 }
 0xc3b   :  { %v1892_v24 = vadd.f32 %v2056_v52, %v1891_v56 }
 0xc3c   :  { %v1901_v59 = vmax.f32 %v1897_v54, 0.0 }
 0xc3d   :  { %v1900_v58 = vmax.f32 %v1892_v24, 0.0 }
 0xc3f   :  { %2273 = vmatprep.mubr.f32.mxu1 %v1900_v58 }
 0xc40   :  { %2274 = vmatmul.mubr.f32.vlgmr.msra.gmra.mrb[16].mxu1 %v1901_v59 }
 0xd13   :  { %v2275_v26 = vpop.f32.mrb[16].mxu1 }
 0xd14   :  { %v1997_v63 = vadd.f32 %v2275_v26, %v2059_v61  ;;  %v1991_v0 = vpop.f32.mrb[17].mxu1 }
 0xd15   :  { %v1992_v1 = vadd.f32 %v2059_v61, %v1991_v0 }
 0xd16   :  { %v2001_v2 = vadd.f32 %v1997_v63, %v1807_v47 }
 0xd17   :  { %v2000_v3 = vadd.f32 %v1992_v1, %v1806_v45 }
 0xd18   :  { %2003 = vst.msk [vmem:[#allocation6 + $0x8] sm:$0xff] %vm63_vm0, %v2001_v2 }
 0xd19   :  { %2002 = vst.msk [vmem:[#allocation6] sm:$0xff] %vm63_vm0, %v2000_v3 }
 0xd1a   :  { %2424 = shalt.err (!%p2421_p12)
}
 0xd1b   :  { %s2425_s30 = scalar_lea.hbm %s2904_s13, 256 }
 0xd1c   :  { %p2426_p13 = scmp.ne.s32.totalorder %s2904_s13, %s2425_s30  ;;  %p2429_p0 = scmp.lt.u32.totalorder %s2425_s30, %s2904_s13 }
 0xd1e   :  { %p2431_p1 = pnand %p2429_p0, %p2426_p13 }
 0xd20   :  { %2434 = shalt.err (!%p2431_p1)
}
 0xd21   :  { %2015 = dma.vmem_to_hbm [thread:$0]  %s2010_s6, 256, %s2904_s13, [#allocation5], %s2440_s18, %s2440_s18, %s2441_s19  }
 0xd22   :  { %2437 = dma.done.wait [#allocation5], 256  }
 0xd23   :  { %2438 = vsyncadd [#allocation5], 4294967040 }
 0xd24   :  { %2019 = vsyncpa [#allocation4], 1 }
 0xd25   :  { %2020 = vsyncpa [#allocation5], 1 }

</bundles_post_ra>
